<compile_context>
chip_gen: v7x
topology: tpu7x:2x2x1
jax: 0.10.0
libtpu: 0.0.40
codegen_flags: <defaults>
</compile_context>

<pallas_src>
import functools
import numpy as np
import jax
import jax.numpy as jnp
from jax.experimental import pallas as pl
from jax.experimental.pallas import tpu as pltpu

NUM_CLASSES = 10
INIT_K = 3
LAMDA = 1.0
N_SPLIT = 2          # leading "parallel" grid axis (uses both v7x TensorCores)


# ----------------------- setup glue (mimics update_classpair, 'conf' distance) ----------
def _confidence_row(c, class_output):
    n_class = class_output.shape[0]
    out = np.zeros(n_class)
    c_out = class_output[c]
    for k in range(n_class):
        if c == k:
            continue
        out[k] = max(c_out[c] - c_out[k], 0.0) + 1e-9
    return out


def compute_class_pairs(class_output_mat, k=INIT_K):
    """Deterministic re-implementation of ClassDistLoss.update_classpair ('conf')."""
    n = class_output_mat.shape[0]
    dist = np.stack([_confidence_row(c, class_output_mat) for c in range(n)])
    pairs = np.zeros((n, k), dtype=np.int32)
    for c in range(n):
        pd = np.minimum(dist[c, :], dist[:, c])
        pairs[c] = np.argsort(pd)[1:k + 1]
    return pairs


def _round_up(x, m):
    return (x + m - 1) // m * m


# ----------------------- Pallas kernel ---------------------------------------------------
def class_dist_loss_kernel(logits_ref, bits_ref, o_ref, acc_ref, *, scale):
    # grid = (N_SPLIT, steps); axis 1 is the batch-tile reduction axis.
    i = pl.program_id(1)

    @pl.when(i == 0)
    def _init():
        acc_ref[...] = jnp.zeros_like(acc_ref)

    x = logits_ref[...].astype(jnp.float32)                  # (C, TN) f32 math (v5e-safe)
    c, tn = x.shape
    bits = bits_ref[...]                                     # (1, TN) int32 class bitmask

    # softmax numerator/denominator; all reductions over the class (sublane) axis.
    m = jnp.max(x, axis=0, keepdims=True)                    # (1, TN)
    e = jnp.exp(x - m)                                       # (C, TN)
    denom = jnp.sum(e, axis=0, keepdims=True)                # (1, TN)

    # scatter-mask via bit test: class c selected iff bit c of the row's bitmask is set.
    class_ids = jax.lax.broadcasted_iota(jnp.int32, (c, tn), 0)
    sel = jnp.bitwise_and(jnp.right_shift(bits, class_ids), 1)        # (C, TN) 0/1
    num = jnp.sum(jnp.where(sel != 0, e, 0.0), axis=0, keepdims=True)  # (1, TN)

    # Per-tile scalar contribution (exact divide on lane-dense data), accumulated once.
    acc_ref[...] += jnp.sum(num / denom, axis=1, keepdims=True)        # (1, 1)

    # Finalize once per grid half: scaled partial, broadcast into a lane-dense block.
    @pl.when(i == pl.num_programs(1) - 1)
    def _finalize():
        o_ref[...] = jnp.broadcast_to(acc_ref[...] * scale, o_ref.shape)


def class_dist_loss(logits, targets, class_pairs, lamda=LAMDA, tn_max=16384):
    n, c = logits.shape
    k = class_pairs.shape[1]

    # glue: pairs_label = class_pairs[targets]; pack into a per-row class bitmask.
    pairs_label = jnp.take(class_pairs.astype(jnp.int32), targets, axis=0)   # (N, K)
    bits = jnp.zeros((n,), jnp.int32)
    for j in range(k):                                       # K small & static; OR handles dups
        bits = bits | (jnp.int32(1) << pairs_label[:, j])

    # Layout plumbing: batch on the lane axis.
    logits_t = jnp.transpose(logits)                         # (C, N)

    tn = _round_up(min(int(tn_max), max(n, 1)), 128)         # lane-dense tile, multiple of 128
    n_pad = _round_up(n, N_SPLIT * tn)
    if n_pad != n:
        logits_t = jnp.pad(logits_t, ((0, 0), (0, n_pad - n)))
        bits = jnp.pad(bits, (0, n_pad - n))                 # bitmask 0 -> contributes 0
    bits = bits.reshape(1, n_pad)

    steps = n_pad // (N_SPLIT * tn)
    batch_block = lambda p, i: (0, p * steps + i)

    in_bytes = logits.dtype.itemsize
    # double-buffered inputs + f32 in-kernel temporaries, with headroom; capped at 32 MiB
    # so it stays comfortably under v7x's 64 MiB physical VMEM.
    tile_bytes = c * tn * in_bytes + tn * 4
    vmem_needed = 2 * 2 * tile_bytes + 6 * c * tn * 4
    vmem_limit = int(min(max(2 * vmem_needed, 4 << 20), 32 << 20))

    kernel = functools.partial(class_dist_loss_kernel, scale=float(lamda) / float(n))

    out = pl.pallas_call(
        kernel,
        out_shape=jax.ShapeDtypeStruct((N_SPLIT * 8, 128), jnp.float32),
        grid=(N_SPLIT, steps),
        in_specs=[
            pl.BlockSpec((c, tn), batch_block),              # batch on lanes, classes on sublanes
            pl.BlockSpec((1, tn), batch_block),              # lane-dense bitmask
        ],
        out_specs=pl.BlockSpec((8, 128), lambda p, i: (p, 0)),
        scratch_shapes=[pltpu.VMEM((1, 1), jnp.float32)],
        compiler_params=pltpu.CompilerParams(
            dimension_semantics=("parallel", "arbitrary"),   # split halves across v7x cores
            vmem_limit_bytes=vmem_limit,
        ),
        cost_estimate=pl.CostEstimate(
            flops=10 * n_pad * c,
            transcendentals=n_pad * c,
            bytes_accessed=n_pad * c * in_bytes + n_pad * 4 + N_SPLIT * 8 * 128 * 4,
        ),
    )(logits_t, bits)

    # Each half wrote its scaled partial into rows [p*8, :]; add the partials.
    return jnp.sum(out[::8, 0])


# ----------------------- pure-JAX reference for validation -----------------------------
def reference_loss(logits, targets, class_pairs, lamda=LAMDA):
    soft = jax.nn.softmax(logits.astype(jnp.float32), axis=1)
    pairs_label = jnp.take(class_pairs, targets, axis=0)
    n, c = logits.shape
    mask = jnp.max(jax.nn.one_hot(pairs_label, c, dtype=jnp.float32), axis=1)
    return jnp.mean(mask * soft) * c * lamda


if __name__ == "__main__":
    key = jax.random.PRNGKey(0)
    k1, k2, k3, k4, k5 = jax.random.split(key, 5)

    # Synthetic per-class output (confusion-style) matrix to build class_pairs deterministically.
    class_output_mat = np.asarray(
        jax.nn.softmax(jax.random.normal(k3, (NUM_CLASSES, NUM_CLASSES)), axis=1)
    )
    class_pairs = jnp.asarray(compute_class_pairs(class_output_mat, INIT_K))  # (C, K) int32

    # Small case (single tile per half).
    batch = 8
    logits = jax.random.normal(k1, (batch, NUM_CLASSES), dtype=jnp.float32)
    targets = jax.random.randint(k2, (batch,), 0, NUM_CLASSES)
    loss = jax.block_until_ready(class_dist_loss(logits, targets, class_pairs))
    ref = reference_loss(logits, targets, class_pairs)
    assert np.allclose(np.asarray(loss), np.asarray(ref), rtol=1e-4, atol=1e-6), (loss, ref)

    # Larger case with a small tile cap to exercise multi-step accumulation, padding,
    # and both grid halves.
    batch2 = 1000
    logits2 = jax.random.normal(k4, (batch2, NUM_CLASSES), dtype=jnp.float32)
    targets2 = jax.random.randint(k5, (batch2,), 0, NUM_CLASSES)
    loss2 = jax.block_until_ready(class_dist_loss(logits2, targets2, class_pairs, tn_max=128))
    ref2 = reference_loss(logits2, targets2, class_pairs)
    assert np.allclose(np.asarray(loss2), np.asarray(ref2), rtol=1e-4, atol=1e-6), (loss2, ref2)

    print("KERNEL_OK")
</pallas_src>

<mosaic_0001>
module attributes {stable_mosaic.version = 11 : i64} {
  func.func @class_dist_loss_kernel(%arg0: i32, %arg1: i32, %arg2: memref<10x128xf32, #tpu.memory_space<vmem>>, %arg3: memref<1x128xi32, #tpu.memory_space<vmem>>, %arg4: memref<8x128xf32, #tpu.memory_space<vmem>>, %arg5: memref<1x1xf32, #tpu.memory_space<vmem>>) attributes {dimension_semantics = [#tpu.dimension_semantics<parallel>, #tpu.dimension_semantics<arbitrary>], iteration_bounds = array<i64: 2, 1>, scalar_prefetch = 0 : i64, scratch_operands = 1 : i64, tpu.core_type = #tpu.core_type<tc>, window_params = [{transform_indices = @transform_0, window_bounds = array<i64: 10, 128>}, {transform_indices = @transform_1, window_bounds = array<i64: 1, 128>}, {transform_indices = @transform_2, window_bounds = array<i64: 8, 128>}]} {
    %c0_i32 = arith.constant 0 : i32
    %0 = arith.cmpi eq, %arg1, %c0_i32 : i32
    %1 = arith.extui %0 : i1 to i32
    %c0_i32_0 = arith.constant 0 : i32
    %2 = arith.cmpi ne, %1, %c0_i32_0 : i32
    scf.if %2 {
      %cst_15 = arith.constant 0.000000e+00 : f32
      %32 = vector.broadcast %cst_15 : f32 to vector<1x1xf32>
      %c0_16 = arith.constant 0 : index
      %c0_17 = arith.constant 0 : index
      %33 = vector.load %arg5[%c0_16, %c0_17] : memref<1x1xf32, #tpu.memory_space<vmem>>, vector<1x1xf32>
      tpu.vector_store %arg5[%c0_16, %c0_17], %32 {strides = array<i32>} : memref<1x1xf32, #tpu.memory_space<vmem>>, vector<1x1xf32>,
    } else {
    }
    %c0 = arith.constant 0 : index
    %c0_1 = arith.constant 0 : index
    %3 = vector.load %arg2[%c0, %c0_1] : memref<10x128xf32, #tpu.memory_space<vmem>>, vector<10x128xf32>
    %c0_2 = arith.constant 0 : index
    %c0_3 = arith.constant 0 : index
    %4 = vector.load %arg3[%c0_2, %c0_3] : memref<1x128xi32, #tpu.memory_space<vmem>>, vector<1x128xi32>
    %cst = arith.constant dense<0xFF800000> : vector<128xf32>
    %5 = vector.multi_reduction <maximumf>, %3, %cst [0] : vector<10x128xf32> to vector<128xf32>
    %6 = vector.shape_cast %5 : vector<128xf32> to vector<1x128xf32>
    %7 = vector.broadcast %6 : vector<1x128xf32> to vector<10x128xf32>
    %8 = arith.subf %3, %7 : vector<10x128xf32>
    %9 = math.exp %8 : vector<10x128xf32>
    %cst_4 = arith.constant dense<0.000000e+00> : vector<128xf32>
    %10 = vector.multi_reduction <add>, %9, %cst_4 [0] : vector<10x128xf32> to vector<128xf32>
    %11 = vector.shape_cast %10 : vector<128xf32> to vector<1x128xf32>
    %12 = tpu.iota {dimensions = array<i32: 0>} : vector<10x128xi32>
    %13 = vector.broadcast %4 : vector<1x128xi32> to vector<10x128xi32>
    %14 = arith.shrsi %13, %12 : vector<10x128xi32>
    %c1_i32 = arith.constant 1 : i32
    %15 = vector.broadcast %c1_i32 : i32 to vector<10x128xi32>
    %16 = arith.andi %14, %15 : vector<10x128xi32>
    %c0_i32_5 = arith.constant 0 : i32
    %17 = vector.broadcast %c0_i32_5 : i32 to vector<10x128xi32>
    %18 = arith.cmpi ne, %16, %17 : vector<10x128xi32>
    %cst_6 = arith.constant 0.000000e+00 : f32
    %19 = vector.broadcast %cst_6 : f32 to vector<10x128xf32>
    %20 = arith.select %18, %9, %19 : vector<10x128xi1>, vector<10x128xf32>
    %cst_7 = arith.constant dense<0.000000e+00> : vector<128xf32>
    %21 = vector.multi_reduction <add>, %20, %cst_7 [0] : vector<10x128xf32> to vector<128xf32>
    %22 = vector.shape_cast %21 : vector<128xf32> to vector<1x128xf32>
    %c0_8 = arith.constant 0 : index
    %c0_9 = arith.constant 0 : index
    %23 = vector.load %arg5[%c0_8, %c0_9] : memref<1x1xf32, #tpu.memory_space<vmem>>, vector<1x1xf32>
    %24 = arith.divf %22, %11 : vector<1x128xf32>
    %cst_10 = arith.constant dense<0.000000e+00> : vector<1xf32>
    %25 = vector.multi_reduction <add>, %24, %cst_10 [1] : vector<1x128xf32> to vector<1xf32>
    %26 = vector.shape_cast %25 : vector<1xf32> to vector<1x1xf32>
    %27 = arith.addf %23, %26 : vector<1x1xf32>
    %c0_11 = arith.constant 0 : index
    %c0_12 = arith.constant 0 : index
    %28 = vector.load %arg5[%c0_11, %c0_12] : memref<1x1xf32, #tpu.memory_space<vmem>>, vector<1x1xf32>
    tpu.vector_store %arg5[%c0_11, %c0_12], %27 {strides = array<i32>} : memref<1x1xf32, #tpu.memory_space<vmem>>, vector<1x1xf32>,
    %c0_i32_13 = arith.constant 0 : i32
    %29 = arith.cmpi eq, %arg1, %c0_i32_13 : i32
    %30 = arith.extui %29 : i1 to i32
    %c0_i32_14 = arith.constant 0 : i32
    %31 = arith.cmpi ne, %30, %c0_i32_14 : i32
    scf.if %31 {
      %c0_15 = arith.constant 0 : index
      %c0_16 = arith.constant 0 : index
      %32 = vector.load %arg5[%c0_15, %c0_16] : memref<1x1xf32, #tpu.memory_space<vmem>>, vector<1x1xf32>
      %cst_17 = arith.constant 1.250000e-01 : f32
      %33 = vector.broadcast %cst_17 : f32 to vector<1x1xf32>
      %34 = arith.mulf %32, %33 : vector<1x1xf32>
      %35 = vector.shape_cast %34 : vector<1x1xf32> to vector<1x1xf32>
      %36 = vector.broadcast %35 : vector<1x1xf32> to vector<8x128xf32>
      %c0_18 = arith.constant 0 : index
      %c0_19 = arith.constant 0 : index
      %37 = vector.load %arg4[%c0_18, %c0_19] : memref<8x128xf32, #tpu.memory_space<vmem>>, vector<8x128xf32>
      tpu.vector_store %arg4[%c0_18, %c0_19], %36 {strides = array<i32>} : memref<8x128xf32, #tpu.memory_space<vmem>>, vector<8x128xf32>,
    } else {
    }
    return
  }
  func.func @transform_0(%arg0: i32, %arg1: i32) -> (i32, i32) {
    %c1_i32 = arith.constant 1 : i32
    %0 = arith.muli %arg0, %c1_i32 : i32
    %1 = arith.addi %0, %arg1 : i32
    %c0_i32 = arith.constant 0 : i32
    %c0_i32_0 = arith.constant 0 : i32
    return %c0_i32, %1 : i32, i32
  }
  func.func @transform_1(%arg0: i32, %arg1: i32) -> (i32, i32) {
    %c1_i32 = arith.constant 1 : i32
    %0 = arith.muli %arg0, %c1_i32 : i32
    %1 = arith.addi %0, %arg1 : i32
    %c0_i32 = arith.constant 0 : i32
    %c0_i32_0 = arith.constant 0 : i32
    return %c0_i32, %1 : i32, i32
  }
  func.func @transform_2(%arg0: i32, %arg1: i32) -> (i32, i32) {
    %c0_i32 = arith.constant 0 : i32
    %c0_i32_0 = arith.constant 0 : i32
    return %arg0, %c0_i32 : i32, i32
  }
}

</mosaic_0001>

<bundles_post_ra>
// kernel: tpu_custom_call.1
= control target key start
LH: loop header
LB: loop body
LE: loop exit
PB: predicated region body
PF: predicated region fallthrough
CT: control target
= control target key end

     0   :  { %7 = vsyncpa [#allocation4], 0  ;;  %s784_s0 = inlined_call_operand.hbm [shape: f32[10,256], index: 0, kind: input, shape index: {}]   ;;  %s785_s1 = inlined_call_operand.vmem [shape: s32[1,256], index: 1, kind: input, shape index: {}]   ;;  %s786_s2 = inlined_call_operand.hbm [shape: f32[16,128], index: 2, kind: output, shape index: {}]  }
   0x1   :  { %9 = vsyncpa [#allocation4 + $0x1], 0 }
   0x2   :  { %10 = vsyncpa [#allocation5], 0 }
   0x3   :  { %12 = vsyncpa [#allocation5 + $0x1], 0  ;;  %s602_s9 = smov 0   ;;  %s604_s10 = smov 0  }
   0x4   :  { %s606_s11 = smov 0   ;;  %s608_s12 = smov 0  }
   0x5   :  { %s610_s13 = smov 0   ;;  %s612_s14 = smov 0  }
   0x6 LB: > { %s378_s15 = sadd.s32 4294967295, %s578_s14   ;;  %s379_s16 = sadd.s32 4294967294, %s578_s14   ;;  %s578_s14 = sphi %s612_s14, %s18_s14   ;;  %s574_s13 = sphi %s610_s13, %s800_s13   ;;  %s570_s12 = sphi %s608_s12, %s799_s12   ;;  %s566_s11 = sphi %s606_s11, %s798_s11   ;;  %s562_s10 = sphi %s604_s10, %s797_s10   ;;  %s558_s9 = sphi %s602_s9, %s796_s9  }
   0x7   : > { %s30_s17 = sadd.s32 1, %s574_s13  ;;  %s39_s18 = sadd.s32 1, %s566_s11 }
   0x8   : > { %p32_p0 = scmp.ge.s32.totalorder %s30_s17, 2  ;;  %p46_p1 = scmp.ne.s32.totalorder %s566_s11, %s562_s10 }
   0x9   : > { %p47_p2 = scmp.eq.s32.totalorder %s578_s14, 0  ;;  %p52_p3 = scmp.ne.s32.totalorder %s562_s10, %s558_s9 }
   0xa   : > { %s802_s17 = smov (%p32_p0, %s30_s17), 0  ;;  %p53_p5 = scmp.eq.s32.totalorder %s378_s15, 0 }
   0xb   : > { %p643_p4 = por %p47_p2, %p46_p1  ;;  %s36_s20 = ssub.s32 %s574_s13, %s802_s17 }
   0xc   : > { %p104_p6 = scmp.eq.s32.totalorder %s378_s15, 1  ;;  %p37_p7 = scmp.eq.s32.totalorder %s36_s20, 0 }
   0xd   : > { %p649_p8 = por %p53_p5, %p52_p3  ;;  %p110_p10 = scmp.eq.s32.totalorder %s379_s16, 1 }
   0xe   : > { %p653_p9 = por %p104_p6, %p46_p1  ;;  %p404_p13 = scmp.lt.s32.totalorder %s578_s14, 2 }
   0xf   : > { %s658_s23 = scalar_select %p37_p7, %s566_s11, %s39_s18  }
  0x10   : > { %s790_s22 = scalar_select %p653_p9, 1, 0 }
  0x11   : > { %p660_p11 = por %p110_p10, %p52_p3  ;;  %s130_s25 = sand.u32 1, %s566_s11  }
  0x12   : > { %s382_s26 = sshll.u32 %s130_s25, 4  ;;  %s383_s27 = sshll.u32 %s574_s13, 7 }
  0x13   : > { %s791_s24 = scalar_select %p660_p11, 1, 0 }
  0x14   : > { %s671_s30 = scalar_lea.hbm %s784_s0, %s383_s27  ;;  %s134_s3 = scalar_lea.vmem [#allocation3], %s382_s26 }
  0x15   : > { %s141_s4 = sshll.u32 %s134_s3, 4  ;;  %p677_p0 = pnand %p404_p13, %p643_p4  ;;  %s673_s4 = int_to_ptr.vmem [resolvable:$true] %s141_s4 }
  0x16   : > { %s681_s6 = scalar_lea.sflag [#allocation4], %s130_s25  ;;  %s466_s7 = scalar_lea.hbm %s671_s30, 256 }
  0x17   : > { %p467_p1 = scmp.ne.s32.totalorder %s671_s30, %s466_s7  ;;  %p468_p2 = pneg %p677_p0 }
  0x18   : > { %s471_s16 = scalar_lea.hbm %s784_s0, 512  ;;  %p472_p4 = scmp.lt.u32.totalorder %s671_s30, %s784_s0 }
  0x19   : > { %p469_p3 = pnand %p468_p2, %p467_p1  ;;  %p473_p6 = scmp.lt.u32.totalorder %s471_s16, %s466_s7 }
  0x1a   : > { %p475_p10 = scmp.lt.u32.totalorder %s466_s7, %s671_s30 }
  0x1b   : > { %p470_p5 = pneg %p469_p3  ;;  %p474_p7 = por %p473_p6, %p472_p4 }
  0x1d   : > { %p476_p13 = por %p475_p10, %p474_p7 }
  0x1f   : > { %p477_p12 = pnand %p476_p13, %p470_p5 }
  0x21   : > { %480 = shalt.err (!%p477_p12)
}
  0x22   : > { %s481_s20 = scalar_lea.vmem %s673_s4, 256  ;;  %s580_s25 = smov [#allocation3]  }
  0x23   : > { %p482_p1 = scmp.ne.s32.totalorder %s673_s4, %s481_s20  ;;  %s486_s26 = sshll.u32 %s580_s25, 4  ;;  %s487_s26 = int_to_ptr.vmem [resolvable:$false] %s486_s26 }
  0x24   : > { %s488_s27 = scalar_lea.vmem %s487_s26, 512  ;;  %p489_p9 = scmp.lt.s32.totalorder %s673_s4, %s487_s26 }
  0x25   : > { %p484_p3 = pnand %p482_p1, %p468_p2  ;;  %p490_p4 = scmp.lt.s32.totalorder %s488_s27, %s481_s20 }
  0x27   : > { %p485_p11 = pneg %p484_p3  ;;  %p491_p6 = por %p490_p4, %p489_p9 }
  0x29   : > { %p492_p7 = pnand %p491_p6, %p485_p11 }
  0x2b   : > { %495 = shalt.err (!%p492_p7)
}
  0x2c   : > { %s581_s28 = smov 256   ;;  %s582_s29 = smov 128  }
  0x2d   : > { %s583_s3 = smov 8   ;;  %p384_p12 = scmp.ge.s32.totalorder %s578_s14, 1 }
  0x2e   : > { %399 = dma.hbm_to_vmem [thread:$0]  (!%p677_p0), %s671_s30, 256, %s673_s4, %s681_s6, %s581_s28, %s582_s29, %s583_s3  }
  0x2f   : > { %p157_p2 = scmp.lt.s32.totalorder %s578_s14, 3 }
  0x31   : > { %p158_p5 = pnand %p384_p12, %p157_p2 }
  0x32   : > { %s712_s7 = sand.u32 (!%p158_p5), 1, %s562_s10  }
  0x33   : > { %161 = sbr.rel (%p158_p5) target bundleno = 418 (0x1a2), region = 28  ;;  %s385_s8 = sshll.u32 (!%p158_p5), %s712_s7, 4 }
  0x34   : > { %s164_s15 = scalar_lea.sflag (!%p158_p5), [#allocation4], %s712_s7  ;;  %s167_s16 = scalar_lea.vmem (!%p158_p5), [#allocation3], %s385_s8 }
  0x3a   : > { %549 = dma.done.wait (%p649_p8), %s164_s15, 256  }
  0x3b   : > { %551 = vsyncadd (%p649_p8), %s164_s15, 4294967040  ;;  %vm202_vm0 = vcmask 0   ;;  %v584_v0 = vmov 0.0   ;;  %vm207_vm1 = vcmask 1041408   ;;  %v204_v1 = vld [vmem:[%s167_s16] sm:$0xff]  ;;  %p194_p9 = scmp.lt.s32.totalorder %s570_s12, 1  ;;  %v230_v8 = vlaneseq }
  0x3c   : > { %203 = vst.msk [vmem:[#allocation2] sm:$0x1] %vm202_vm0, %v584_v0  ;;  %v205_v2 = vld [vmem:[%s167_s16 + $0x8] sm:$0x3]  ;;  %v585_v45 = vmov 0   ;;  %s386_s6 = sshll.u32 %s712_s7, 3 }
  0x3d   : > { %v208_v3 = vsel %vm207_vm1, %v205_v2, -inf  ;;  %s195_s30 = scalar_select %p194_p9, %s570_s12, 1  ;;  %v231_v11 = vshrl.u32 %v230_v8, 7  ;;  %459 = vset.pattern.permute.xlu0 %v585_v45 }
  0x3e   : > { %v209_v4 = vmax.f32 %v204_v1, %v208_v3  ;;  %s191_s18 = scalar_lea.vmem [#allocation6], %s386_s6  ;;  %s389_s20 = sshll.u32 %s570_s12, 7 }
  0x3f   : > { %s196_s5 = scalar_lea.vmem %s785_s1, %s195_s30  ;;  %v232_v16 = vadd.s32 8, %v231_v11  ;;  %v269_v49 = vsub.s32 0, %v231_v11  ;;  %s290_s19 = sshll.u32 %s191_s18, 4  ;;  %s732_s19 = int_to_ptr.vmem [resolvable:$true] %s290_s19 }
  0x40   : > { %v210_v5 = vrot.slane %v209_v4, 4  ;;  %v387_v15 = vld [vmem:[%s196_s5] ss:$0 sm:$0xff]  ;;  %s737_s27 = scalar_lea.hbm %s786_s2, %s389_s20  ;;  %s277_s28 = scalar_lea.sflag [#allocation5], %s712_s7 }
  0x41   : > { %v237_v19 = vshra.s32 %v387_v15, %v231_v11  ;;  %v238_v20 = vshra.s32 %v387_v15, %v232_v16  ;;  %s496_s29 = scalar_lea.vmem %s732_s19, 128  ;;  %p793_p11 = scmp.ne.s32.totalorder %s790_s22, 0 }
  0x42   : > { %v211_v6 = vmax.f32 %v209_v4, %v210_v5  ;;  %p497_p8 = scmp.ne.s32.totalorder %s732_s19, %s496_s29  ;;  %s586_s3 = smov [#allocation6]  }
  0x43   : > { %v239_v21 = vand.u32 1, %v237_v19  ;;  %v240_v22 = vand.u32 1, %v238_v20  ;;  %v253_v46 = vld [vmem:[#allocation2] sm:$0x1]  ;;  %s500_s12 = sshll.u32 %s586_s3, 4  ;;  %s501_s12 = int_to_ptr.vmem [resolvable:$false] %s500_s12 }
  0x44   : > { %v212_v7 = vrot.slane %v211_v6, 2  ;;  %p498_p0 = pnand %p497_p8, %p793_p11  ;;  %s502_s8 = scalar_lea.vmem %s501_s12, 256 }
  0x45   : > { %vm241_vm2 = vcmp.ne.s32.totalorder %v239_v21, 0  ;;  %vm242_vm3 = vcmp.ne.s32.totalorder %v240_v22, 0  ;;  %p503_p13 = scmp.lt.s32.totalorder %s732_s19, %s501_s12  ;;  %p504_p1 = scmp.lt.s32.totalorder %s502_s8, %s496_s29 }
  0x46   : > { %v213_v9 = vmax.f32 %v211_v6, %v212_v7  ;;  %p499_p10 = pneg %p498_p0 }
  0x47   : > { %p505_p3 = por %p504_p1, %p503_p13 }
  0x48   : > { %v214_v10 = vrot.slane %v213_v9, 1 }
  0x49   : > { %p506_p4 = pnand %p505_p3, %p499_p10 }
  0x4a   : > { %v215_v12 = vmax.f32 %v213_v9, %v214_v10 }
  0x4c   : > { %v216_v13 = vsub.f32 %v204_v1, %v215_v12  ;;  %v217_v14 = vsub.f32 %v205_v2, %v215_v12 }
  0x4e   : > { %v218_v17 = vmul.f32 1.442695, %v216_v13  ;;  %v220_v18 = vmul.f32 1.442695, %v217_v14 }
  0x50   : > { %460 = vpow2.f32 %v218_v17 }
  0x51   : > { %462 = vpow2.f32 %v220_v18 }
  0x5a   : > { %v461_v23 = vpop.eup %460 }
  0x5b   : > { %v463_v24 = vpop.eup %462  ;;  %v243_v25 = vsel %vm241_vm2, %v461_v23, 0.0 }
  0x5c   : > { %v222_v26 = vsel %vm207_vm1, %v463_v24, 0.0  ;;  %v244_v27 = vsel %vm242_vm3, %v463_v24, 0.0 }
  0x5d   : > { %v223_v28 = vadd.f32 %v461_v23, %v222_v26  ;;  %v245_v29 = vsel %vm207_vm1, %v244_v27, 0.0 }
  0x5e   : > { %v246_v30 = vadd.f32 %v245_v29, %v243_v25 }
  0x5f   : > { %v224_v31 = vrot.slane %v223_v28, 4 }
  0x60   : > { %v247_v32 = vrot.slane %v246_v30, 4 }
  0x61   : > { %v225_v33 = vadd.f32 %v224_v31, %v223_v28 }
  0x62   : > { %v248_v34 = vadd.f32 %v247_v32, %v246_v30 }
  0x63   : > { %v226_v35 = vrot.slane %v225_v33, 2 }
  0x64   : > { %v249_v37 = vrot.slane %v248_v34, 2 }
  0x65   : > { %v227_v36 = vadd.f32 %v226_v35, %v225_v33 }
  0x66   : > { %v250_v40 = vadd.f32 %v249_v37, %v248_v34 }
  0x67   : > { %v228_v38 = vrot.slane %v227_v36, 1 }
  0x68   : > { %v251_v41 = vrot.slane %v250_v40, 1 }
  0x69   : > { %v229_v39 = vadd.f32 %v228_v38, %v227_v36 }
  0x6a   : > { %v252_v42 = vadd.f32 %v251_v41, %v250_v40 }
  0x6b   : > { %464 = vrcp.f32 %v229_v39 }
  0x75   : > { %v465_v43 = vpop.eup %464 }
  0x76   : > { %v255_v44 = vmul.f32 %v465_v43, %v252_v42 }
  0x78   : > { %256 = vadd.xlane.f32.xlu0 %v255_v44 }
 0x105   : > { %v257_v47 = vpop.xlane.xlu0 %256 }
 0x106   : > { %v258_v48 = vadd.f32 %v257_v47, %v253_v46 }
 0x108   : > { %260 = vst.msk [vmem:[#allocation2] sm:$0x1] %vm202_vm0, %v258_v48 }
 0x10f   : > { %v264_v50 = vld [vmem:[#allocation2] sm:$0x1] }
 0x110   : > { %v265_v51 = vmul.f32 0.125, %v264_v50 }
 0x112   : > { %v270_v52 = vrot.slane %v265_v51, %v269_v49 }
 0x114   : > { %272 = vperm.xlu0 %459, %v270_v52  }
 0x193   : > { %v273_v53 = vpop.permute.xlu0 %272 }
 0x194   : > { %275 = vst [vmem:[%s191_s18] sm:$0xff] %v273_v53 }
 0x195   : > { %509 = shalt.err (!%p506_p4)
}
 0x196   : > { %s510_s7 = scalar_lea.hbm %s737_s27, 128  ;;  %s514_s30 = scalar_lea.hbm %s786_s2, 256 }
 0x197   : > { %p511_p6 = scmp.ne.s32.totalorder %s737_s27, %s510_s7  ;;  %p515_p2 = scmp.lt.u32.totalorder %s737_s27, %s786_s2 }
 0x198   : > { %p516_p5 = scmp.lt.u32.totalorder %s514_s30, %s510_s7  ;;  %p518_p8 = scmp.lt.u32.totalorder %s510_s7, %s737_s27 }
 0x199   : > { %p512_p7 = pnand %p511_p6, %p793_p11 }
 0x19a   : > { %p517_p9 = por %p516_p5, %p515_p2 }
 0x19b   : > { %p513_p12 = pneg %p512_p7 }
 0x19c   : > { %p519_p0 = por %p518_p8, %p517_p9 }
 0x19e   : > { %p520_p10 = pnand %p519_p0, %p513_p12 }
 0x1a0   : > { %523 = shalt.err (!%p520_p10)
}
 0x1a1   : > { %394 = dma.vmem_to_hbm [thread:$0]  (%p793_p11), %s732_s19, 128, %s737_s27, %s277_s28  }
 0x1a2 PF: > { %s302_s5 = sand.u32 1, %s558_s9   ;;  %p794_p13 = scmp.ne.s32.totalorder %s791_s24, 0 }
 0x1a3   : > { %p795_p1 = scmp.ge.s32.totalorder %s578_s14, 2  ;;  %s303_s6 = scalar_lea.sflag [#allocation5], %s302_s5 }
 0x1a5   : > { %p401_p3 = pnand %p795_p1, %p794_p13 }
 0x1a7   : > { %553 = dma.done.wait (!%p401_p3), %s303_s6, 128  }
 0x1a8   : > { %555 = vsyncadd (!%p401_p3), %s303_s6, 4294967168  ;;  %s18_s14 = sadd.s32 1, %s578_s14   ;;  %s796_s9 = smov %s562_s10 }
 0x1a9   : > { %p15_p4 = scmp.ge.s32.totalorder %s18_s14, 4   ;;  %s797_s10 = smov %s566_s11 }
 0x1aa   : > { %s798_s11 = smov %s658_s23  ;;  %s799_s12 = smov %s574_s13 }
 0x1ab   : > { %s800_s13 = smov %s802_s17  ;;  %17 = sbr.rel (!%p15_p4) target bundleno = 6 (0x6), region = 84 }
 0x1b2   :  { %308 = vsyncpa [#allocation4], 1 }
 0x1b3   :  { %310 = vsyncpa [#allocation4 + $0x1], 1 }
 0x1b4   :  { %311 = vsyncpa [#allocation5], 1 }
 0x1b5   :  { %313 = vsyncpa [#allocation5 + $0x1], 1 }

</bundles_post_ra>
